<compile_context>
chip_gen: v7x
topology: tpu7x:2x2x1
jax: 0.10.0
libtpu: 0.0.40
codegen_flags: <defaults>
</compile_context>

<pallas_src>
import jax
import jax.numpy as jnp
from jax.experimental import pallas as pl
from jax.experimental.pallas import tpu as pltpu


def _round_up(x, m):
    return ((x + m - 1) // m) * m


def _vmem_budget_bytes():
    """Per-generation scoped-VMEM budget used both for tile sizing and the limit."""
    try:
        kind = jax.devices()[0].device_kind.lower()
    except Exception:
        kind = ""
    if "v7" in kind or "tpu7" in kind:
        return 48 * 1024 * 1024      # v7x: 64 MiB physical VMEM per TensorCore
    if any(tag in kind for tag in ("v6", "v5", "v4")):
        return 96 * 1024 * 1024      # 128 MiB physical VMEM
    return 16 * 1024 * 1024          # conservative fallback (older / unknown)


def _conv_mean_kernel(p_ref, w_ref, b_ref, o_ref, acc_ref):
    """Tiled matmul: bf16 patches x bf16 folded weights -> f32 acc; bias at end."""
    @pl.when(pl.program_id(1) == 0)
    def _():
        acc_ref[...] = jnp.zeros_like(acc_ref)

    acc_ref[...] += jnp.dot(p_ref[...], w_ref[...],
                            preferred_element_type=jnp.float32)

    @pl.when(pl.program_id(1) == pl.num_programs(1) - 1)
    def _():
        o_ref[...] = (acc_ref[...] + b_ref[...]).astype(o_ref.dtype)


def inception_block_v1_forward(x_nchw, weights, biases, num_kernels,
                               tm_request=1024):
    """weights[i]: (K_i, K_i, Cin, Cout) with K_i = 2*i+1; biases[i]: (Cout,).

    Equivalent to mean_i(Conv2d_{k=2i+1, pad=i}(x) + b_i), stride 1 (NCHW).
    """
    n, cin, h, w = x_nchw.shape
    cout = weights[0].shape[-1]
    pmax = num_kernels - 1
    kmax = 2 * pmax + 1
    k_total = kmax * kmax * cin

    # --- fold the num_kernels "same" convs into one Kmax x Kmax conv, with
    #     the 1/num_kernels mean applied; bias mean kept separate (f32). ---
    w_sum = jnp.zeros((kmax, kmax, cin, cout), jnp.float32)
    b_sum = jnp.zeros((cout,), jnp.float32)
    for i in range(num_kernels):
        pad = pmax - i
        w_sum = w_sum + jnp.pad(weights[i],
                                ((pad, pad), (pad, pad), (0, 0), (0, 0)))
        b_sum = b_sum + biases[i]
    w_mean = w_sum * (1.0 / num_kernels)
    b_mean = b_sum * (1.0 / num_kernels)

    # --- lane-dense output width: 128 (or multiple of 256 when Cout > 128,
    #     to fill the 256-wide v6e/v7x MXU). ---
    cout_pad = _round_up(cout, 128) if cout <= 128 else _round_up(cout, 256)

    # --- contraction tiling: tk is a multiple of 128; K padded up to tk*nk. ---
    tk = min(_round_up(k_total, 128), 1024)
    k_pad = _round_up(k_total, tk)
    grid_k = k_pad // tk

    w_flat = w_mean.reshape(k_total, cout)
    w_flat = jnp.pad(w_flat, ((0, k_pad - k_total), (0, cout_pad - cout)))
    w_flat = w_flat.astype(jnp.bfloat16)                     # streamed in bf16
    b_row = jnp.pad(b_mean, (0, cout_pad - cout)).reshape(1, cout_pad)  # f32

    # --- NCHW -> NHWC (bf16), spatial pad, im2col: (M, Kmax*Kmax*Cin). ---
    x_nhwc = jnp.transpose(x_nchw, (0, 2, 3, 1)).astype(jnp.bfloat16)
    x_pad = jnp.pad(x_nhwc, ((0, 0), (pmax, pmax), (pmax, pmax), (0, 0)))
    m = n * h * w
    patches = jnp.concatenate(
        [x_pad[:, dh:dh + h, dw:dw + w, :].reshape(m, cin)
         for dh in range(kmax) for dw in range(kmax)],
        axis=1)                                               # (M, k_total) bf16
    patches = jnp.pad(patches, ((0, 0), (0, k_pad - k_total)))

    # --- size the M tile from the per-generation VMEM budget. ---
    budget = _vmem_budget_bytes()
    usable = int(budget * 0.8)
    # per-row bytes: 2 patch bufs (bf16) + 2 out bufs (f32) + acc scratch (f32)
    per_row = 2 * tk * 2 + 2 * cout_pad * 4 + cout_pad * 4
    # resident-ish cost: 2 weight bufs (bf16) + 2 bias bufs (f32) + slack
    fixed = 2 * tk * cout_pad * 2 + 2 * cout_pad * 4 + (64 << 10)
    tm_cap = max(8, (usable - fixed) // per_row)
    tm = max(8, min(tm_request, tm_cap))
    tm = min(tm, _round_up(m, 8))
    if m >= 16:
        # guarantee grid_m >= 2 so both v7x TensorCores get work on the
        # "parallel" M axis.
        tm = min(tm, _round_up(-(-m // 2), 8))
    tm = max(8, (tm // 8) * 8)

    m_pad = _round_up(m, tm)
    grid_m = m_pad // tm
    if m_pad != m:
        patches = jnp.pad(patches, ((0, m_pad - m), (0, 0)))

    out_flat = pl.pallas_call(
        _conv_mean_kernel,
        out_shape=jax.ShapeDtypeStruct((m_pad, cout_pad), x_nchw.dtype),
        grid_spec=pltpu.PrefetchScalarGridSpec(
            num_scalar_prefetch=0,
            grid=(grid_m, grid_k),
            in_specs=[
                # patches: tiled over M and K
                pl.BlockSpec((tm, tk), lambda i, k: (i, k)),
                # folded weights: constant in M, tiled over K
                pl.BlockSpec((tk, cout_pad), lambda i, k: (k, 0)),
                # bias row: constant index_map -> resident
                pl.BlockSpec((1, cout_pad), lambda i, k: (0, 0)),
            ],
            out_specs=pl.BlockSpec((tm, cout_pad), lambda i, k: (i, 0)),
            scratch_shapes=[pltpu.VMEM((tm, cout_pad), jnp.float32)],
        ),
        compiler_params=pltpu.CompilerParams(
            # M axis independent (megacore / v7x dual TC), K axis is a reduction
            dimension_semantics=("parallel", "arbitrary"),
            vmem_limit_bytes=budget),
    )(patches, w_flat, b_row)

    out_nhwc = out_flat[:m, :cout].reshape(n, h, w, cout)
    return jnp.transpose(out_nhwc, (0, 3, 1, 2))              # back to NCHW


def init_params(key, in_channels, out_channels, num_kernels):
    """Deterministic synthetic params: kaiming_normal(fan_out, relu), bias=0."""
    weights, biases = [], []
    for i in range(num_kernels):
        k = 2 * i + 1
        key, sub = jax.random.split(key)
        fan_out = out_channels * k * k
        std = (2.0 / fan_out) ** 0.5
        weights.append(
            jax.random.normal(sub, (k, k, in_channels, out_channels),
                              jnp.float32) * std)
        biases.append(jnp.zeros((out_channels,), jnp.float32))
    return weights, biases


def reference_forward(x, weights, biases, num_kernels):
    """Pure-JAX f32 reference matching the PyTorch forward (per-kernel convs + mean)."""
    outs = []
    for i in range(num_kernels):
        w_oihw = jnp.transpose(weights[i], (3, 2, 0, 1))
        y = jax.lax.conv_general_dilated(
            x, w_oihw, window_strides=(1, 1), padding=[(i, i), (i, i)],
            dimension_numbers=("NCHW", "OIHW", "NCHW"))
        outs.append(y + biases[i][None, :, None, None])
    return jnp.mean(jnp.stack(outs, axis=-1), axis=-1)


if __name__ == "__main__":
    key = jax.random.PRNGKey(0)
    batch, in_channels, out_channels, height, width = 2, 4, 8, 16, 16
    num_kernels = 6

    key, kx = jax.random.split(key)
    x = jax.random.normal(kx, (batch, in_channels, height, width), jnp.float32)
    weights, biases = init_params(key, in_channels, out_channels, num_kernels)

    out = inception_block_v1_forward(x, weights, biases, num_kernels)
    out = jax.block_until_ready(out)

    ref = reference_forward(x, weights, biases, num_kernels)
    assert out.shape == (batch, out_channels, height, width)
    # bf16-streamed operands with f32 accumulation -> loosened tolerance
    max_err = float(jnp.max(jnp.abs(out - ref)))
    assert jnp.allclose(out, ref, atol=3e-2, rtol=3e-2), max_err

    print("KERNEL_OK")
</pallas_src>

<mosaic_0001>
module attributes {stable_mosaic.version = 11 : i64} {
  func.func @_conv_mean_kernel(%arg0: i32, %arg1: i32, %arg2: memref<256x512xbf16, #tpu.memory_space<vmem>>, %arg3: memref<512x128xbf16, #tpu.memory_space<vmem>>, %arg4: memref<1x128xf32, #tpu.memory_space<vmem>>, %arg5: memref<256x128xf32, #tpu.memory_space<vmem>>, %arg6: memref<256x128xf32, #tpu.memory_space<vmem>>) attributes {dimension_semantics = [#tpu.dimension_semantics<parallel>, #tpu.dimension_semantics<arbitrary>], iteration_bounds = array<i64: 2, 1>, scalar_prefetch = 0 : i64, scratch_operands = 1 : i64, tpu.core_type = #tpu.core_type<tc>, window_params = [{transform_indices = @transform_0, window_bounds = array<i64: 256, 512>}, {transform_indices = @transform_1, window_bounds = array<i64: 512, 128>}, {pipeline_mode = #tpu.pipeline_mode<synchronous>, transform_indices = @transform_2, window_bounds = array<i64: 1, 128>}, {transform_indices = @transform_3, window_bounds = array<i64: 256, 128>}]} {
    %c0_i32 = arith.constant 0 : i32
    %0 = arith.cmpi eq, %arg1, %c0_i32 : i32
    %1 = arith.extui %0 : i1 to i32
    %c0_i32_0 = arith.constant 0 : i32
    %2 = arith.cmpi ne, %1, %c0_i32_0 : i32
    scf.if %2 {
      %cst_10 = arith.constant 0.000000e+00 : f32
      %12 = vector.broadcast %cst_10 : f32 to vector<256x128xf32>
      %c0_11 = arith.constant 0 : index
      %c0_12 = arith.constant 0 : index
      %13 = vector.load %arg6[%c0_11, %c0_12] : memref<256x128xf32, #tpu.memory_space<vmem>>, vector<256x128xf32>
      tpu.vector_store %arg6[%c0_11, %c0_12], %12 {strides = array<i32>} : memref<256x128xf32, #tpu.memory_space<vmem>>, vector<256x128xf32>,
    } else {
    }
    %c0 = arith.constant 0 : index
    %c0_1 = arith.constant 0 : index
    %3 = vector.load %arg6[%c0, %c0_1] : memref<256x128xf32, #tpu.memory_space<vmem>>, vector<256x128xf32>
    %c0_2 = arith.constant 0 : index
    %c0_3 = arith.constant 0 : index
    %4 = vector.load %arg2[%c0_2, %c0_3] : memref<256x512xbf16, #tpu.memory_space<vmem>>, vector<256x512xbf16>
    %c0_4 = arith.constant 0 : index
    %c0_5 = arith.constant 0 : index
    %5 = vector.load %arg3[%c0_4, %c0_5] : memref<512x128xbf16, #tpu.memory_space<vmem>>, vector<512x128xbf16>
    %cst = arith.constant dense<0.000000e+00> : vector<256x128xf32>
    %6 = tpu.matmul %4, %5, %cst {dimension_numbers = #tpu.dot_dimension_numbers<[1], [0], [0], [1], [0, 0, 1, 1], [], []>} : vector<256x512xbf16>, vector<512x128xbf16>, vector<256x128xf32> -> vector<256x128xf32>
    %7 = arith.addf %3, %6 : vector<256x128xf32>
    %c0_6 = arith.constant 0 : index
    %c0_7 = arith.constant 0 : index
    %8 = vector.load %arg6[%c0_6, %c0_7] : memref<256x128xf32, #tpu.memory_space<vmem>>, vector<256x128xf32>
    tpu.vector_store %arg6[%c0_6, %c0_7], %7 {strides = array<i32>} : memref<256x128xf32, #tpu.memory_space<vmem>>, vector<256x128xf32>,
    %c0_i32_8 = arith.constant 0 : i32
    %9 = arith.cmpi eq, %arg1, %c0_i32_8 : i32
    %10 = arith.extui %9 : i1 to i32
    %c0_i32_9 = arith.constant 0 : i32
    %11 = arith.cmpi ne, %10, %c0_i32_9 : i32
    scf.if %11 {
      %c0_10 = arith.constant 0 : index
      %c0_11 = arith.constant 0 : index
      %12 = vector.load %arg6[%c0_10, %c0_11] : memref<256x128xf32, #tpu.memory_space<vmem>>, vector<256x128xf32>
      %c0_12 = arith.constant 0 : index
      %c0_13 = arith.constant 0 : index
      %13 = vector.load %arg4[%c0_12, %c0_13] : memref<1x128xf32, #tpu.memory_space<vmem>>, vector<1x128xf32>
      %14 = vector.broadcast %13 : vector<1x128xf32> to vector<256x128xf32>
      %15 = arith.addf %12, %14 : vector<256x128xf32>
      %c0_14 = arith.constant 0 : index
      %c0_15 = arith.constant 0 : index
      %16 = vector.load %arg5[%c0_14, %c0_15] : memref<256x128xf32, #tpu.memory_space<vmem>>, vector<256x128xf32>
      tpu.vector_store %arg5[%c0_14, %c0_15], %15 {strides = array<i32>} : memref<256x128xf32, #tpu.memory_space<vmem>>, vector<256x128xf32>,
    } else {
    }
    return
  }
  func.func @transform_0(%arg0: i32, %arg1: i32) -> (i32, i32) {
    %c0_i32 = arith.constant 0 : i32
    return %arg0, %arg1 : i32, i32
  }
  func.func @transform_1(%arg0: i32, %arg1: i32) -> (i32, i32) {
    %c0_i32 = arith.constant 0 : i32
    %c0_i32_0 = arith.constant 0 : i32
    return %arg1, %c0_i32 : i32, i32
  }
  func.func @transform_2(%arg0: i32, %arg1: i32) -> (i32, i32) {
    %c0_i32 = arith.constant 0 : i32
    %c0_i32_0 = arith.constant 0 : i32
    %c0_i32_1 = arith.constant 0 : i32
    return %c0_i32, %c0_i32_0 : i32, i32
  }
  func.func @transform_3(%arg0: i32, %arg1: i32) -> (i32, i32) {
    %c0_i32 = arith.constant 0 : i32
    %c0_i32_0 = arith.constant 0 : i32
    return %arg0, %c0_i32 : i32, i32
  }
}

</mosaic_0001>

<bundles_post_ra>
// kernel: tpu_custom_call.1
= control target key start
LH: loop header
LB: loop body
LE: loop exit
PB: predicated region body
PF: predicated region fallthrough
CT: control target
= control target key end

     0   :  { %8 = vsyncpa [#allocation4], 0  ;;  %s2626_s0 = inlined_call_operand.hbm [shape: bf16[512,512], index: 0, kind: input, shape index: {}]   ;;  %s2627_s1 = inlined_call_operand.hbm [shape: bf16[512,128], index: 1, kind: input, shape index: {}]   ;;  %s2628_s2 = inlined_call_operand.vmem [shape: f32[1,128], index: 2, kind: input, shape index: {}]   ;;  %s2629_s3 = inlined_call_operand.hbm [shape: f32[512,128], index: 3, kind: output, shape index: {}]  }
   0x1   :  { %10 = vsyncpa [#allocation4 + $0x1], 0 }
   0x2   :  { %11 = vsyncpa [#allocation7], 0 }
   0x3   :  { %12 = vsyncpa [#allocation5], 0 }
   0x4   :  { %14 = vsyncpa [#allocation5 + $0x1], 0  ;;  %s2268_s12 = smov 0   ;;  %s2270_s13 = smov 0  }
   0x5   :  { %s2272_s14 = smov 0   ;;  %s2274_s15 = smov 0  }
   0x6   :  { %s2276_s16 = smov 0   ;;  %s2278_s17 = smov 0  }
   0x7 LB: > { %s1544_s18 = sadd.s32 4294967295, %s2237_s17   ;;  %s1545_s19 = sadd.s32 4294967294, %s2237_s17   ;;  %s2237_s17 = sphi %s2278_s17, %s20_s17   ;;  %s2233_s16 = sphi %s2276_s16, %s2653_s16   ;;  %s2229_s15 = sphi %s2274_s15, %s2652_s15   ;;  %s2225_s14 = sphi %s2272_s14, %s2651_s14   ;;  %s2221_s13 = sphi %s2270_s13, %s2650_s13   ;;  %s2217_s12 = sphi %s2268_s12, %s2649_s12  }
   0x8   : > { %p54_p0 = scmp.ne.s32.totalorder %s2221_s13, %s2217_s12  ;;  %p2302_p1 = scmp.eq.s32.totalorder %s1544_s18, 0 }
   0x9   : > { %p2306_p2 = scmp.eq.s32.totalorder %s1544_s18, 1  ;;  %p131_p3 = scmp.eq.s32.totalorder %s1545_s19, 1 }
   0xa   : > { %s2634_s20 = scalar_select %p2302_p1, 1, 0 }
   0xb   : > { %s2635_s21 = scalar_select %p2306_p2, 1, 0 }
   0xc   : > { %p2312_p4 = por %p2302_p1, %p54_p0  ;;  %p1546_p5 = scmp.ge.s32.totalorder %s2237_s17, 1 }
   0xd   : > { %p2317_p6 = por %p131_p3, %p54_p0  ;;  %p138_p7 = scmp.lt.s32.totalorder %s2237_s17, 3 }
   0xe   : > { %s2636_s22 = scalar_select %p2312_p4, 1, 0 }
   0xf   : > { %s2637_s23 = scalar_select %p2317_p6, 1, 0 }
  0x10   : > { %p2322_p8 = pnand %p1546_p5, %p138_p7  ;;  %s2239_s25 = smov [#allocation6]  }
  0x11   : > { %s153_s26 = sshll.u32 %s2239_s25, 4  ;;  %s32_s28 = sadd.s32 1, %s2233_s16  ;;  %s154_s26 = int_to_ptr.vmem [resolvable:$true] %s153_s26 }
  0x12   : > { %s2638_s24 = scalar_select %p2322_p8, 1, 0 }
  0x13   : > { %p1894_p9 = pneg %p2322_p8  ;;  %s2093_s4 = scalar_lea.hbm %s2627_s1, 4096 }
  0x14   : > { %p2094_p12 = scmp.ne.s32.totalorder %s2627_s1, %s2093_s4  ;;  %p2100_p5 = scmp.lt.u32.totalorder %s2093_s4, %s2627_s1 }
  0x15   : > { %p2331_p11 = pnand %p1894_p9, %p2302_p1 }
  0x17   : > { %p2095_p13 = pneg %p2331_p11 }
  0x19   : > { %p2096_p0 = pnand %p2095_p13, %p2094_p12 }
  0x1b   : > { %p2097_p3 = pneg %p2096_p0 }
  0x1d   : > { %p2102_p7 = pnand %p2100_p5, %p2097_p3 }
  0x1f   : > { %2105 = shalt.err (!%p2102_p7)
}
  0x20   : > { %s2106_s9 = scalar_lea.vmem %s154_s26, 4096  ;;  %p2114_p1 = scmp.lt.s32.totalorder %s154_s26, %s154_s26 }
  0x21   : > { %p2107_p9 = scmp.ne.s32.totalorder %s154_s26, %s2106_s9  ;;  %p2115_p4 = scmp.lt.s32.totalorder %s2106_s9, %s2106_s9 }
  0x23   : > { %p2109_p10 = pnand %p2107_p9, %p2095_p13  ;;  %p2116_p8 = por %p2115_p4, %p2114_p1 }
  0x25   : > { %p2110_p6 = pneg %p2109_p10 }
  0x27   : > { %p2117_p2 = pnand %p2116_p8, %p2110_p6 }
  0x29   : > { %2120 = shalt.err (!%p2117_p2)
}
  0x2a   : > { %s2240_s10 = smov 64   ;;  %s2241_s11 = smov 4  }
  0x2b   : > { %1897 = dma.hbm_to_vmem [thread:$0]  (!%p2331_p11), %s2627_s1, 4096, %s154_s26, [#allocation7], %s2240_s10, %s2240_s10, %s2241_s11  }
  0x2c   : > { %p34_p1 = scmp.ge.s32.totalorder %s32_s28, 2  ;;  %s41_s25 = sadd.s32 1, %s2225_s14 }
  0x2d   : > { %p48_p2 = scmp.ne.s32.totalorder %s2225_s14, %s2221_s13  ;;  %p49_p4 = scmp.eq.s32.totalorder %s2237_s17, 0 }
  0x2e   : > { %s2655_s28 = smov (%p34_p1, %s32_s28), 0  ;;  %p2641_p8 = scmp.ne.s32.totalorder %s2635_s21, 0 }
  0x2f   : > { %p2358_p6 = por %p49_p4, %p48_p2  ;;  %s36_s27 = ssub.s32 %s2233_s16, %s2655_s28 }
  0x30   : > { %p2364_p10 = por %p2641_p8, %p48_p2  ;;  %p1907_p12 = scmp.lt.s32.totalorder %s2237_s17, 2 }
  0x31   : > { %p39_p11 = scmp.eq.s32.totalorder %s36_s27, 0  ;;  %s170_s26 = sand.u32 1, %s2225_s14  }
  0x32   : > { %s1549_s4 = sshll.u32 %s170_s26, 9  ;;  %s1660_s6 = sshll.u32 %s2233_s16, 13 }
  0x33   : > { %s2373_s5 = scalar_select %p39_p11, %s2225_s14, %s41_s25  }
  0x34   : > { %s2379_s9 = scalar_lea.hbm %s2626_s0, %s1660_s6  ;;  %s174_s21 = scalar_lea.vmem [#allocation3], %s1549_s4 }
  0x35   : > { %s184_s10 = sshll.u32 %s174_s21, 4  ;;  %p2385_p13 = pnand %p1907_p12, %p2358_p6  ;;  %s2381_s10 = int_to_ptr.vmem [resolvable:$true] %s184_s10 }
  0x36   : > { %s2389_s18 = scalar_lea.sflag [#allocation4], %s170_s26  ;;  %s2121_s19 = scalar_lea.hbm %s2379_s9, 8192 }
  0x37   : > { %p2122_p0 = scmp.ne.s32.totalorder %s2379_s9, %s2121_s19  ;;  %p2123_p3 = pneg %p2385_p13 }
  0x38   : > { %s2126_s29 = scalar_lea.hbm %s2626_s0, 16384  ;;  %p2127_p9 = scmp.lt.u32.totalorder %s2379_s9, %s2626_s0 }
  0x39   : > { %p2124_p5 = pnand %p2123_p3, %p2122_p0  ;;  %p2128_p1 = scmp.lt.u32.totalorder %s2126_s29, %s2121_s19 }
  0x3a   : > { %p2130_p4 = scmp.lt.u32.totalorder %s2121_s19, %s2379_s9 }
  0x3b   : > { %p2125_p7 = pneg %p2124_p5  ;;  %p2129_p2 = por %p2128_p1, %p2127_p9 }
  0x3d   : > { %p2131_p6 = por %p2130_p4, %p2129_p2 }
  0x3f   : > { %p2132_p8 = pnand %p2131_p6, %p2125_p7 }
  0x41   : > { %2135 = shalt.err (!%p2132_p8)
}
  0x42   : > { %s2136_s26 = scalar_lea.vmem %s2381_s10, 8192  ;;  %s2242_s7 = smov [#allocation3]  }
  0x43   : > { %p2137_p12 = scmp.ne.s32.totalorder %s2381_s10, %s2136_s26  ;;  %s2141_s8 = sshll.u32 %s2242_s7, 4  ;;  %s2142_s8 = int_to_ptr.vmem [resolvable:$false] %s2141_s8 }
  0x44   : > { %s2143_s21 = scalar_lea.vmem %s2142_s8, 16384  ;;  %p2144_p5 = scmp.lt.s32.totalorder %s2381_s10, %s2142_s8 }
  0x45   : > { %p2139_p11 = pnand %p2137_p12, %p2123_p3  ;;  %p2145_p9 = scmp.lt.s32.totalorder %s2143_s21, %s2136_s26 }
  0x47   : > { %p2140_p0 = pneg %p2139_p11  ;;  %p2146_p1 = por %p2145_p9, %p2144_p5 }
  0x49   : > { %p2147_p2 = pnand %p2146_p1, %p2140_p0 }
  0x4b   : > { %2150 = shalt.err (!%p2147_p2)
}
  0x4c   : > { %s2243_s19 = smov 256   ;;  %s2244_s25 = smov 16  }
  0x4d   : > { %1901 = dma.hbm_to_vmem [thread:$0]  (!%p2385_p13), %s2379_s9, 8192, %s2381_s10, %s2389_s18, %s2243_s19, %s2243_s19, %s2244_s25  }
  0x4e   : > { %p2644_p3 = scmp.ne.s32.totalorder %s2638_s24, 0 }
  0x4f   : > { %s2420_s27 = sand.u32 (!%p2644_p3), 1, %s2221_s13   ;;  %p2645_p7 = scmp.ne.s32.totalorder (!%p2644_p3), %s2636_s22, 0 }
  0x50   : > { %196 = sbr.rel (%p2644_p3) target bundleno = 482 (0x1e2), region = 32  ;;  %s1554_s29 = sshll.u32 (!%p2644_p3), %s2420_s27, 9 }
  0x51   : > { %s199_s4 = scalar_lea.sflag (!%p2644_p3), [#allocation4], %s2420_s27  ;;  %s2424_s6 = scalar_lea.vmem (!%p2644_p3), [#allocation3], %s1554_s29 }
  0x57   : > { %2204 = dma.done.wait (%p2645_p7), %s199_s4, 8192  }
  0x58   : > { %2206 = vsyncadd (%p2645_p7), %s199_s4, 4294959104  ;;  %p2646_p13 = scmp.ne.s32.totalorder %s2634_s20, 0 }
  0x5a   : > { %2208 = dma.done.wait (%p2646_p13), [#allocation7], 4096  }
  0x5b   : > { %2210 = vsyncadd (%p2646_p13), [#allocation7], 4294963200  ;;  %v1965_v0 = vld [vmem:[#allocation6 + $0x40] sm:$0xff]   ;;  %v1969_v4 = vld [vmem:[#allocation6 + $0x48] sm:$0xff]   ;;  %s1556_s20 = sshll.u32 %s2420_s27, 8  ;;  %s1661_s10 = sshll.u32 %s2229_s15, 12 }
  0x5c   : > { %v1966_v1 = vld [vmem:[#allocation6 + $0xc0] sm:$0xff]   ;;  %1662 = vmatprep.subr.bf16.mxu0 %v1965_v0  ;;  %v1970_v5 = vld [vmem:[#allocation6 + $0xc8] sm:$0xff]   ;;  %v1973_v8 = vld [vmem:[#allocation6 + $0x50] sm:$0xff]   ;;  %s2505_s9 = scalar_lea.vmem [#allocation8], %s1556_s20  ;;  %s2572_s7 = scalar_lea.hbm %s2629_s3, %s1661_s10 }
  0x5d   : > { %v1967_v2 = vld [vmem:[#allocation6] sm:$0xff]   ;;  %1774 = vmatprep.subr.bf16.mxu1 %v1966_v1  ;;  %v1971_v6 = vld [vmem:[#allocation6 + $0x8] sm:$0xff]   ;;  %v1974_v9 = vld [vmem:[#allocation6 + $0xd0] sm:$0xff]   ;;  %s1448_s11 = sshll.u32 %s2505_s9, 4  ;;  %s1435_s8 = scalar_lea.sflag [#allocation5], %s2420_s27  ;;  %s2574_s11 = int_to_ptr.vmem [resolvable:$true] %s1448_s11 }
  0x5e   : > { %v1968_v3 = vld [vmem:[#allocation6 + $0x80] sm:$0xff]   ;;  %1663 = vmatpush3.bf16.msra.mxu0 %v1967_v2  ;;  %v1972_v7 = vld [vmem:[#allocation6 + $0x88] sm:$0xff]   ;;  %v1975_v10 = vld [vmem:[#allocation6 + $0x10] sm:$0xff]   ;;  %s2151_s15 = scalar_lea.vmem %s2574_s11, 4096  ;;  %s2245_s21 = smov [#allocation8]  }
  0x5f   : > { %1775 = vmatpush3.bf16.msra.mxu1 %v1968_v3  ;;  %1664 = vmatprep.subr.bf16.mxu0 %v1969_v4  ;;  %v1976_v11 = vld [vmem:[#allocation6 + $0x90] sm:$0xff]   ;;  %v1977_v12 = vld [vmem:[#allocation6 + $0x58] sm:$0xff]   ;;  %v1981_v16 = vld [vmem:[#allocation6 + $0x60] sm:$0xff]   ;;  %p2152_p4 = scmp.ne.s32.totalorder %s2574_s11, %s2151_s15  ;;  %s2155_s19 = sshll.u32 %s2245_s21, 4  ;;  %s2156_s19 = int_to_ptr.vmem [resolvable:$false] %s2155_s19 }
  0x60   : > { %1776 = vmatprep.subr.bf16.mxu1 %v1970_v5  ;;  %v1978_v13 = vld [vmem:[#allocation6 + $0xd8] sm:$0xff]   ;;  %v1982_v17 = vld [vmem:[#allocation6 + $0xe0] sm:$0xff]   ;;  %v1985_v20 = vld [vmem:[#allocation6 + $0x68] sm:$0xff]   ;;  %s2157_s25 = scalar_lea.vmem %s2156_s19, 8192  ;;  %p2158_p12 = scmp.lt.s32.totalorder %s2574_s11, %s2156_s19 }
  0x61   : > { %v1979_v14 = vld [vmem:[#allocation6 + $0x18] sm:$0xff]   ;;  %v1983_v18 = vld [vmem:[#allocation6 + $0x20] sm:$0xff]   ;;  %v1986_v21 = vld [vmem:[#allocation6 + $0xe8] sm:$0xff]   ;;  %p2153_p6 = pnand %p2152_p4, %p2364_p10  ;;  %p2159_p11 = scmp.lt.s32.totalorder %s2157_s25, %s2151_s15 }
  0x62   : > { %1665 = vmatpush3.bf16.msra.mxu0 %v1971_v6  ;;  %v1980_v15 = vld [vmem:[#allocation6 + $0x98] sm:$0xff]   ;;  %v1984_v19 = vld [vmem:[#allocation6 + $0xa0] sm:$0xff]   ;;  %v1987_v22 = vld [vmem:[#allocation6 + $0x28] sm:$0xff]  }
  0x63   : > { %1777 = vmatpush3.bf16.msra.mxu1 %v1972_v7  ;;  %1666 = vmatprep.subr.bf16.mxu0 %v1973_v8  ;;  %v1988_v23 = vld [vmem:[#allocation6 + $0xa8] sm:$0xff]   ;;  %v1989_v24 = vld [vmem:[#allocation6 + $0x70] sm:$0xff]   ;;  %v1993_v28 = vld [vmem:[#allocation6 + $0x78] sm:$0xff]   ;;  %p2154_p8 = pneg %p2153_p6  ;;  %p2160_p0 = por %p2159_p11, %p2158_p12 }
  0x64   : > { %1778 = vmatprep.subr.bf16.mxu1 %v1974_v9  ;;  %v1990_v25 = vld [vmem:[#allocation6 + $0xf0] sm:$0xff]   ;;  %v1994_v29 = vld [vmem:[#allocation6 + $0xf8] sm:$0xff]  }
  0x65   : > { %v1991_v26 = vld [vmem:[#allocation6 + $0x30] sm:$0xff]   ;;  %v1995_v30 = vld [vmem:[#allocation6 + $0x38] sm:$0xff]   ;;  %p2161_p5 = pnand %p2160_p0, %p2154_p8 }
  0x66   : > { %1667 = vmatpush3.bf16.msra.mxu0 %v1975_v10  ;;  %v1992_v27 = vld [vmem:[#allocation6 + $0xb0] sm:$0xff]   ;;  %v1996_v31 = vld [vmem:[#allocation6 + $0xb8] sm:$0xff]  }
  0x67   : > { %1779 = vmatpush3.bf16.msra.mxu1 %v1976_v11  ;;  %1668 = vmatprep.subr.bf16.mxu0 %v1977_v12  ;;  %v1997_v32 = vld [vmem:[%s2424_s6] ss:$16 sps:$4 sm:$0xff]   ;;  %v1999_v33 = vld [vmem:[%s2424_s6 + $0x4] ss:$16 sps:$4 sm:$0xff]   ;;  %v2000_v34 = vld [vmem:[%s2424_s6 + $0x8] ss:$16 sps:$4 sm:$0xff]  }
  0x68   : > { %1780 = vmatprep.subr.bf16.mxu1 %v1978_v13  ;;  %v2002_v35 = vld [vmem:[%s2424_s6 + $0xc] ss:$16 sps:$4 sm:$0xff]   ;;  %974 = vmatprep.mubr.bf16.mxu0 %v1999_v33  ;;  %v2003_v36 = vld [vmem:[%s2424_s6 + $0x24] ss:$16 sps:$4 sm:$0xff]   ;;  %v2007_v38 = vld [vmem:[%s2424_s6 + $0x20] ss:$16 sps:$4 sm:$0xff]  }
  0x69   : > { %1135 = vmatprep.mubr.bf16.mxu1 %v2002_v35  ;;  %v2005_v37 = vld [vmem:[%s2424_s6 + $0x2c] ss:$16 sps:$4 sm:$0xff]   ;;  %v2008_v39 = vld [vmem:[%s2424_s6 + $0x28] ss:$16 sps:$4 sm:$0xff]   ;;  %v2009_v40 = vld [vmem:[%s2424_s6 + $0x44] ss:$16 sps:$4 sm:$0xff]  }
  0x6a   : > { %1669 = vmatpush3.bf16.msra.mxu0 %v1979_v14  ;;  %v2011_v41 = vld [vmem:[%s2424_s6 + $0x4c] ss:$16 sps:$4 sm:$0xff]   ;;  %v2013_v42 = vld [vmem:[%s2424_s6 + $0x40] ss:$16 sps:$4 sm:$0xff]   ;;  %v2014_v43 = vld [vmem:[%s2424_s6 + $0x48] ss:$16 sps:$4 sm:$0xff]  }
  0x6b   : > { %1781 = vmatpush3.bf16.msra.mxu1 %v1980_v15  ;;  %1670 = vmatprep.subr.bf16.mxu0 %v1981_v16  ;;  %v2015_v44 = vld [vmem:[%s2424_s6 + $0x64] ss:$16 sps:$4 sm:$0xff]   ;;  %v2017_v45 = vld [vmem:[%s2424_s6 + $0x6c] ss:$16 sps:$4 sm:$0xff]   ;;  %v2019_v46 = vld [vmem:[%s2424_s6 + $0x60] ss:$16 sps:$4 sm:$0xff]  }
  0x6c   : > { %1782 = vmatprep.subr.bf16.mxu1 %v1982_v17  ;;  %v2020_v47 = vld [vmem:[%s2424_s6 + $0x68] ss:$16 sps:$4 sm:$0xff]   ;;  %v2021_v48 = vld [vmem:[%s2424_s6 + $0x84] ss:$16 sps:$4 sm:$0xff]   ;;  %v2023_v49 = vld [vmem:[%s2424_s6 + $0x8c] ss:$16 sps:$4 sm:$0xff]  }
  0x6d   : > { %v2025_v50 = vld [vmem:[%s2424_s6 + $0x80] ss:$16 sps:$4 sm:$0xff]   ;;  %v2026_v51 = vld [vmem:[%s2424_s6 + $0x88] ss:$16 sps:$4 sm:$0xff]   ;;  %v2027_v52 = vld [vmem:[%s2424_s6 + $0xa4] ss:$16 sps:$4 sm:$0xff]  }
  0x6e   : > { %1671 = vmatpush3.bf16.msra.mxu0 %v1983_v18  ;;  %v2029_v53 = vld [vmem:[%s2424_s6 + $0xac] ss:$16 sps:$4 sm:$0xff]   ;;  %v2031_v54 = vld [vmem:[%s2424_s6 + $0xa0] ss:$16 sps:$4 sm:$0xff]   ;;  %v2032_v55 = vld [vmem:[%s2424_s6 + $0xa8] ss:$16 sps:$4 sm:$0xff]  }
  0x6f   : > { %1783 = vmatpush3.bf16.msra.mxu1 %v1984_v19  ;;  %1672 = vmatprep.subr.bf16.mxu0 %v1985_v20  ;;  %v2033_v56 = vld [vmem:[%s2424_s6 + $0xc4] ss:$16 sps:$4 sm:$0xff]   ;;  %v2035_v57 = vld [vmem:[%s2424_s6 + $0xcc] ss:$16 sps:$4 sm:$0xff]   ;;  %v2037_v58 = vld [vmem:[%s2424_s6 + $0xc0] ss:$16 sps:$4 sm:$0xff]  }
  0x70   : > { %1784 = vmatprep.subr.bf16.mxu1 %v1986_v21  ;;  %v2038_v59 = vld [vmem:[%s2424_s6 + $0xc8] ss:$16 sps:$4 sm:$0xff]   ;;  %v2039_v60 = vld [vmem:[%s2424_s6 + $0xe4] ss:$16 sps:$4 sm:$0xff]   ;;  %v2041_v61 = vld [vmem:[%s2424_s6 + $0xec] ss:$16 sps:$4 sm:$0xff]  }
  0x71   : > { %v2043_v62 = vld [vmem:[%s2424_s6 + $0xe0] ss:$16 sps:$4 sm:$0xff]   ;;  %v2044_v63 = vld [vmem:[%s2424_s6 + $0xe8] ss:$16 sps:$4 sm:$0xff]   ;;  %v2045_v0 = vld [vmem:[%s2424_s6 + $0x104] ss:$16 sps:$4 sm:$0xff]  }
  0x72   : > { %1673 = vmatpush3.bf16.msra.mxu0 %v1987_v22  ;;  %v2047_v1 = vld [vmem:[%s2424_s6 + $0x10c] ss:$16 sps:$4 sm:$0xff]   ;;  %v2049_v2 = vld [vmem:[%s2424_s6 + $0x100] ss:$16 sps:$4 sm:$0xff]   ;;  %v2050_v3 = vld [vmem:[%s2424_s6 + $0x108] ss:$16 sps:$4 sm:$0xff]  }
  0x73   : > { %1785 = vmatpush3.bf16.msra.mxu1 %v1988_v23  ;;  %1674 = vmatprep.subr.bf16.mxu0 %v1989_v24  ;;  %v2051_v4 = vld [vmem:[%s2424_s6 + $0x124] ss:$16 sps:$4 sm:$0xff]   ;;  %v2053_v5 = vld [vmem:[%s2424_s6 + $0x12c] ss:$16 sps:$4 sm:$0xff]   ;;  %v2055_v6 = vld [vmem:[%s2424_s6 + $0x120] ss:$16 sps:$4 sm:$0xff]  }
  0x74   : > { %1786 = vmatprep.subr.bf16.mxu1 %v1990_v25  ;;  %v2056_v7 = vld [vmem:[%s2424_s6 + $0x128] ss:$16 sps:$4 sm:$0xff]   ;;  %v2057_v8 = vld [vmem:[%s2424_s6 + $0x144] ss:$16 sps:$4 sm:$0xff]   ;;  %v2059_v9 = vld [vmem:[%s2424_s6 + $0x14c] ss:$16 sps:$4 sm:$0xff]  }
  0x75   : > { %v2061_v10 = vld [vmem:[%s2424_s6 + $0x140] ss:$16 sps:$4 sm:$0xff]   ;;  %v2062_v11 = vld [vmem:[%s2424_s6 + $0x148] ss:$16 sps:$4 sm:$0xff]   ;;  %v2063_v12 = vld [vmem:[%s2424_s6 + $0x164] ss:$16 sps:$4 sm:$0xff]  }
  0x76   : > { %1675 = vmatpush3.bf16.msra.mxu0 %v1991_v26  ;;  %v2065_v13 = vld [vmem:[%s2424_s6 + $0x16c] ss:$16 sps:$4 sm:$0xff]   ;;  %v2067_v14 = vld [vmem:[%s2424_s6 + $0x160] ss:$16 sps:$4 sm:$0xff]   ;;  %v2068_v15 = vld [vmem:[%s2424_s6 + $0x168] ss:$16 sps:$4 sm:$0xff]  }
  0x77   : > { %1787 = vmatpush3.bf16.msra.mxu1 %v1992_v27  ;;  %1676 = vmatprep.subr.bf16.mxu0 %v1993_v28  ;;  %v2069_v16 = vld [vmem:[%s2424_s6 + $0x184] ss:$16 sps:$4 sm:$0xff]   ;;  %v2071_v17 = vld [vmem:[%s2424_s6 + $0x18c] ss:$16 sps:$4 sm:$0xff]   ;;  %v2073_v18 = vld [vmem:[%s2424_s6 + $0x180] ss:$16 sps:$4 sm:$0xff]  }
  0x78   : > { %1788 = vmatprep.subr.bf16.mxu1 %v1994_v29  ;;  %v2074_v19 = vld [vmem:[%s2424_s6 + $0x188] ss:$16 sps:$4 sm:$0xff]   ;;  %v2075_v20 = vld [vmem:[%s2424_s6 + $0x1a4] ss:$16 sps:$4 sm:$0xff]   ;;  %v2077_v21 = vld [vmem:[%s2424_s6 + $0x1ac] ss:$16 sps:$4 sm:$0xff]  }
  0x79   : > { %v2079_v22 = vld [vmem:[%s2424_s6 + $0x1a0] ss:$16 sps:$4 sm:$0xff]   ;;  %v2080_v23 = vld [vmem:[%s2424_s6 + $0x1a8] ss:$16 sps:$4 sm:$0xff]   ;;  %v2081_v24 = vld [vmem:[%s2424_s6 + $0x1c4] ss:$16 sps:$4 sm:$0xff]  }
  0x7a   : > { %1677 = vmatpush3.bf16.msra.mxu0 %v1995_v30  ;;  %v2083_v25 = vld [vmem:[%s2424_s6 + $0x1cc] ss:$16 sps:$4 sm:$0xff]   ;;  %v2085_v26 = vld [vmem:[%s2424_s6 + $0x1c0] ss:$16 sps:$4 sm:$0xff]   ;;  %v2086_v27 = vld [vmem:[%s2424_s6 + $0x1c8] ss:$16 sps:$4 sm:$0xff]  }
  0x7b   : > { %1789 = vmatpush3.bf16.msra.mxu1 %v1996_v31  ;;  %v2087_v28 = vld [vmem:[%s2424_s6 + $0x1e4] ss:$16 sps:$4 sm:$0xff]   ;;  %v2089_v29 = vld [vmem:[%s2424_s6 + $0x1ec] ss:$16 sps:$4 sm:$0xff]   ;;  %v2091_v30 = vld [vmem:[%s2424_s6 + $0x1e0] ss:$16 sps:$4 sm:$0xff]  }
  0x7c   : > { %v2092_v31 = vld [vmem:[%s2424_s6 + $0x1e8] ss:$16 sps:$4 sm:$0xff]  }
  0x7d   : > { %975 = vmatmul.mubr.bf16.vlgmr.msra.gmra.mrb[0].mxu0 %v1997_v32 }
  0x7e   : > { %1136 = vmatmul.mubr.bf16.vlgmr.msra.gmra.mrb[0].mxu1 %v2000_v34  ;;  %982 = vmatprep.mubr.bf16.mxu0 %v2003_v36 }
  0x7f   : > { %1143 = vmatprep.mubr.bf16.mxu1 %v2005_v37 }
  0x85   : > { %983 = vmatmul.mubr.bf16.gmra.mrb[4].mxu0 %v2007_v38 }
  0x86   : > { %1144 = vmatmul.mubr.bf16.gmra.mrb[4].mxu1 %v2008_v39  ;;  %990 = vmatprep.mubr.bf16.mxu0 %v2009_v40 }
  0x87   : > { %1151 = vmatprep.mubr.bf16.mxu1 %v2011_v41  ;;  %v2502_v41 = vld [vmem:[%s2628_s2] ss:$0 sm:$0xff] }
  0x8d   : > { %991 = vmatmul.mubr.bf16.gmra.mrb[8].mxu0 %v2013_v42 }
  0x8e   : > { %1152 = vmatmul.mubr.bf16.gmra.mrb[8].mxu1 %v2014_v43  ;;  %998 = vmatprep.mubr.bf16.mxu0 %v2015_v44 }
  0x8f   : > { %1159 = vmatprep.mubr.bf16.mxu1 %v2017_v45 }
  0x95   : > { %999 = vmatmul.mubr.bf16.gmra.mrb[12].mxu0 %v2019_v46 }
  0x96   : > { %1160 = vmatmul.mubr.bf16.gmra.mrb[12].mxu1 %v2020_v47  ;;  %1006 = vmatprep.mubr.bf16.mxu0 %v2021_v48 }
  0x97   : > { %1167 = vmatprep.mubr.bf16.mxu1 %v2023_v49 }
  0x9d   : > { %1007 = vmatmul.mubr.bf16.gmra.mrb[16].mxu0 %v2025_v50 }
  0x9e   : > { %1168 = vmatmul.mubr.bf16.gmra.mrb[16].mxu1 %v2026_v51  ;;  %1014 = vmatprep.mubr.bf16.mxu0 %v2027_v52 }
  0x9f   : > { %1175 = vmatprep.mubr.bf16.mxu1 %v2029_v53 }
  0xa5   : > { %1015 = vmatmul.mubr.bf16.gmra.mrb[20].mxu0 %v2031_v54 }
  0xa6   : > { %1176 = vmatmul.mubr.bf16.gmra.mrb[20].mxu1 %v2032_v55  ;;  %1022 = vmatprep.mubr.bf16.mxu0 %v2033_v56 }
  0xa7   : > { %1183 = vmatprep.mubr.bf16.mxu1 %v2035_v57 }
  0xad   : > { %1023 = vmatmul.mubr.bf16.gmra.mrb[24].mxu0 %v2037_v58 }
  0xae   : > { %1184 = vmatmul.mubr.bf16.gmra.mrb[24].mxu1 %v2038_v59  ;;  %1030 = vmatprep.mubr.bf16.mxu0 %v2039_v60 }
  0xaf   : > { %1191 = vmatprep.mubr.bf16.mxu1 %v2041_v61 }
  0xb5   : > { %1031 = vmatmul.mubr.bf16.gmra.mrb[28].mxu0 %v2043_v62 }
  0xb6   : > { %1192 = vmatmul.mubr.bf16.gmra.mrb[28].mxu1 %v2044_v63  ;;  %1038 = vmatprep.mubr.bf16.mxu0 %v2045_v0 }
  0xb7   : > { %1199 = vmatprep.mubr.bf16.mxu1 %v2047_v1 }
  0xbd   : > { %1039 = vmatmul.mubr.bf16.gmra.mrb[32].mxu0 %v2049_v2 }
  0xbe   : > { %1200 = vmatmul.mubr.bf16.gmra.mrb[32].mxu1 %v2050_v3  ;;  %1046 = vmatprep.mubr.bf16.mxu0 %v2051_v4 }
  0xbf   : > { %1207 = vmatprep.mubr.bf16.mxu1 %v2053_v5 }
  0xc5   : > { %1047 = vmatmul.mubr.bf16.gmra.mrb[36].mxu0 %v2055_v6 }
  0xc6   : > { %1208 = vmatmul.mubr.bf16.gmra.mrb[36].mxu1 %v2056_v7  ;;  %1054 = vmatprep.mubr.bf16.mxu0 %v2057_v8 }
  0xc7   : > { %1215 = vmatprep.mubr.bf16.mxu1 %v2059_v9 }
  0xcd   : > { %1055 = vmatmul.mubr.bf16.gmra.mrb[40].mxu0 %v2061_v10 }
  0xce   : > { %1216 = vmatmul.mubr.bf16.gmra.mrb[40].mxu1 %v2062_v11  ;;  %1062 = vmatprep.mubr.bf16.mxu0 %v2063_v12 }
  0xcf   : > { %1223 = vmatprep.mubr.bf16.mxu1 %v2065_v13 }
  0xd5   : > { %1063 = vmatmul.mubr.bf16.gmra.mrb[44].mxu0 %v2067_v14 }
  0xd6   : > { %1224 = vmatmul.mubr.bf16.gmra.mrb[44].mxu1 %v2068_v15  ;;  %1070 = vmatprep.mubr.bf16.mxu0 %v2069_v16 }
  0xd7   : > { %1231 = vmatprep.mubr.bf16.mxu1 %v2071_v17 }
  0xdd   : > { %1071 = vmatmul.mubr.bf16.gmra.mrb[48].mxu0 %v2073_v18 }
  0xde   : > { %1232 = vmatmul.mubr.bf16.gmra.mrb[48].mxu1 %v2074_v19  ;;  %1078 = vmatprep.mubr.bf16.mxu0 %v2075_v20 }
  0xdf   : > { %1239 = vmatprep.mubr.bf16.mxu1 %v2077_v21 }
  0xe5   : > { %1079 = vmatmul.mubr.bf16.gmra.mrb[52].mxu0 %v2079_v22 }
  0xe6   : > { %1240 = vmatmul.mubr.bf16.gmra.mrb[52].mxu1 %v2080_v23  ;;  %1086 = vmatprep.mubr.bf16.mxu0 %v2081_v24 }
  0xe7   : > { %1247 = vmatprep.mubr.bf16.mxu1 %v2083_v25 }
  0xed   : > { %1087 = vmatmul.mubr.bf16.gmra.mrb[56].mxu0 %v2085_v26 }
  0xee   : > { %1248 = vmatmul.mubr.bf16.gmra.mrb[56].mxu1 %v2086_v27  ;;  %1094 = vmatprep.mubr.bf16.mxu0 %v2087_v28 }
  0xef   : > { %1255 = vmatprep.mubr.bf16.mxu1 %v2089_v29 }
  0xf5   : > { %1095 = vmatmul.mubr.bf16.gmra.mrb[60].mxu0 %v2091_v30 }
  0xf6   : > { %1256 = vmatmul.mubr.bf16.gmra.mrb[60].mxu1 %v2092_v31 }
 0x150   : > { %v1678_v32 = vpop.f32.mrb[0].mxu0 }
 0x151   : > { %v1790_v33 = vpop.f32.mrb[0].mxu1  ;;  %v1679_v34 = vpop.f32.mrb[1].mxu0 }
 0x152   : > { %v1680_v35 = vadd.f32 %v1679_v34, %v1678_v32  ;;  %v1791_v36 = vpop.f32.mrb[1].mxu1  ;;  %v1681_v37 = vpop.f32.mrb[2].mxu0 }
 0x153   : > { %v1792_v38 = vadd.f32 %v1791_v36, %v1790_v33  ;;  %v1793_v39 = vpop.f32.mrb[2].mxu1  ;;  %v1682_v40 = vpop.f32.mrb[3].mxu0 }
 0x154   : > { %v1683_v42 = vadd.f32 %v1682_v40, %v1681_v37  ;;  %v1794_v43 = vpop.f32.mrb[3].mxu1 }
 0x155   : > { %v1138_v44 = vadd.f32 %v1792_v38, %v1680_v35  ;;  %v1795_v45 = vadd.f32 %v1794_v43, %v1793_v39 }
 0x157   : > { %v1370_v46 = vadd.f32 %v2502_v41, %v1138_v44  ;;  %v1141_v47 = vadd.f32 %v1795_v45, %v1683_v42 }
 0x158   : > { %v1684_v48 = vpop.f32.mrb[4].mxu0 }
 0x159   : > { %1402 = vst [vmem:[%s2505_s9] sm:$0xff] %v1370_v46  ;;  %v1371_v49 = vadd.f32 %v2502_v41, %v1141_v47  ;;  %v1796_v50 = vpop.f32.mrb[4].mxu1  ;;  %v1685_v51 = vpop.f32.mrb[5].mxu0 }
 0x15a   : > { %v1686_v52 = vadd.f32 %v1685_v51, %v1684_v48  ;;  %v1797_v53 = vpop.f32.mrb[5].mxu1  ;;  %v1687_v54 = vpop.f32.mrb[6].mxu0 }
 0x15b   : > { %1403 = vst [vmem:[%s2505_s9 + $0x8] sm:$0xff] %v1371_v49  ;;  %v1798_v55 = vadd.f32 %v1797_v53, %v1796_v50  ;;  %v1799_v56 = vpop.f32.mrb[6].mxu1  ;;  %v1688_v57 = vpop.f32.mrb[7].mxu0 }
 0x15c   : > { %v1689_v58 = vadd.f32 %v1688_v57, %v1687_v54  ;;  %v1800_v59 = vpop.f32.mrb[7].mxu1 }
 0x15d   : > { %v1146_v60 = vadd.f32 %v1798_v55, %v1686_v52  ;;  %v1801_v61 = vadd.f32 %v1800_v59, %v1799_v56 }
 0x15f   : > { %v1372_v62 = vadd.f32 %v2502_v41, %v1146_v60  ;;  %v1149_v63 = vadd.f32 %v1801_v61, %v1689_v58 }
 0x160   : > { %v1690_v0 = vpop.f32.mrb[8].mxu0 }
 0x161   : > { %1404 = vst [vmem:[%s2505_s9 + $0x10] sm:$0xff] %v1372_v62  ;;  %v1373_v1 = vadd.f32 %v2502_v41, %v1149_v63  ;;  %v1802_v2 = vpop.f32.mrb[8].mxu1  ;;  %v1691_v3 = vpop.f32.mrb[9].mxu0 }
 0x162   : > { %v1692_v4 = vadd.f32 %v1691_v3, %v1690_v0  ;;  %v1803_v5 = vpop.f32.mrb[9].mxu1  ;;  %v1693_v6 = vpop.f32.mrb[10].mxu0 }
 0x163   : > { %1405 = vst [vmem:[%s2505_s9 + $0x18] sm:$0xff] %v1373_v1  ;;  %v1804_v7 = vadd.f32 %v1803_v5, %v1802_v2  ;;  %v1805_v8 = vpop.f32.mrb[10].mxu1  ;;  %v1694_v9 = vpop.f32.mrb[11].mxu0 }
 0x164   : > { %v1695_v10 = vadd.f32 %v1694_v9, %v1693_v6  ;;  %v1806_v11 = vpop.f32.mrb[11].mxu1 }
 0x165   : > { %v1154_v12 = vadd.f32 %v1804_v7, %v1692_v4  ;;  %v1807_v13 = vadd.f32 %v1806_v11, %v1805_v8 }
 0x167   : > { %v1374_v14 = vadd.f32 %v2502_v41, %v1154_v12  ;;  %v1157_v15 = vadd.f32 %v1807_v13, %v1695_v10 }
 0x168   : > { %v1696_v16 = vpop.f32.mrb[12].mxu0 }
 0x169   : > { %1406 = vst [vmem:[%s2505_s9 + $0x20] sm:$0xff] %v1374_v14  ;;  %v1375_v17 = vadd.f32 %v2502_v41, %v1157_v15  ;;  %v1808_v18 = vpop.f32.mrb[12].mxu1  ;;  %v1697_v19 = vpop.f32.mrb[13].mxu0 }
 0x16a   : > { %v1698_v20 = vadd.f32 %v1697_v19, %v1696_v16  ;;  %v1809_v21 = vpop.f32.mrb[13].mxu1  ;;  %v1699_v22 = vpop.f32.mrb[14].mxu0 }
 0x16b   : > { %1407 = vst [vmem:[%s2505_s9 + $0x28] sm:$0xff] %v1375_v17  ;;  %v1810_v23 = vadd.f32 %v1809_v21, %v1808_v18  ;;  %v1811_v24 = vpop.f32.mrb[14].mxu1  ;;  %v1700_v25 = vpop.f32.mrb[15].mxu0 }
 0x16c   : > { %v1701_v26 = vadd.f32 %v1700_v25, %v1699_v22  ;;  %v1812_v27 = vpop.f32.mrb[15].mxu1 }
 0x16d   : > { %v1162_v28 = vadd.f32 %v1810_v23, %v1698_v20  ;;  %v1813_v29 = vadd.f32 %v1812_v27, %v1811_v24 }
 0x16f   : > { %v1376_v30 = vadd.f32 %v2502_v41, %v1162_v28  ;;  %v1165_v31 = vadd.f32 %v1813_v29, %v1701_v26 }
 0x170   : > { %v1702_v32 = vpop.f32.mrb[16].mxu0 }
 0x171   : > { %1408 = vst [vmem:[%s2505_s9 + $0x30] sm:$0xff] %v1376_v30  ;;  %v1377_v33 = vadd.f32 %v2502_v41, %v1165_v31  ;;  %v1814_v34 = vpop.f32.mrb[16].mxu1  ;;  %v1703_v35 = vpop.f32.mrb[17].mxu0 }
 0x172   : > { %v1704_v36 = vadd.f32 %v1703_v35, %v1702_v32  ;;  %v1815_v37 = vpop.f32.mrb[17].mxu1  ;;  %v1705_v38 = vpop.f32.mrb[18].mxu0 }
 0x173   : > { %1409 = vst [vmem:[%s2505_s9 + $0x38] sm:$0xff] %v1377_v33  ;;  %v1816_v39 = vadd.f32 %v1815_v37, %v1814_v34  ;;  %v1817_v40 = vpop.f32.mrb[18].mxu1  ;;  %v1706_v42 = vpop.f32.mrb[19].mxu0 }
 0x174   : > { %v1707_v43 = vadd.f32 %v1706_v42, %v1705_v38  ;;  %v1818_v44 = vpop.f32.mrb[19].mxu1 }
 0x175   : > { %v1170_v45 = vadd.f32 %v1816_v39, %v1704_v36  ;;  %v1819_v46 = vadd.f32 %v1818_v44, %v1817_v40 }
 0x177   : > { %v1378_v47 = vadd.f32 %v2502_v41, %v1170_v45  ;;  %v1173_v48 = vadd.f32 %v1819_v46, %v1707_v43 }
 0x178   : > { %v1708_v49 = vpop.f32.mrb[20].mxu0 }
 0x179   : > { %1410 = vst [vmem:[%s2505_s9 + $0x40] sm:$0xff] %v1378_v47  ;;  %v1379_v50 = vadd.f32 %v2502_v41, %v1173_v48  ;;  %v1820_v51 = vpop.f32.mrb[20].mxu1  ;;  %v1709_v52 = vpop.f32.mrb[21].mxu0 }
 0x17a   : > { %v1710_v53 = vadd.f32 %v1709_v52, %v1708_v49  ;;  %v1821_v54 = vpop.f32.mrb[21].mxu1  ;;  %v1711_v55 = vpop.f32.mrb[22].mxu0 }
 0x17b   : > { %1411 = vst [vmem:[%s2505_s9 + $0x48] sm:$0xff] %v1379_v50  ;;  %v1822_v56 = vadd.f32 %v1821_v54, %v1820_v51  ;;  %v1823_v57 = vpop.f32.mrb[22].mxu1  ;;  %v1712_v58 = vpop.f32.mrb[23].mxu0 }
 0x17c   : > { %v1713_v59 = vadd.f32 %v1712_v58, %v1711_v55  ;;  %v1824_v60 = vpop.f32.mrb[23].mxu1 }
 0x17d   : > { %v1178_v61 = vadd.f32 %v1822_v56, %v1710_v53  ;;  %v1825_v62 = vadd.f32 %v1824_v60, %v1823_v57 }
 0x17f   : > { %v1380_v63 = vadd.f32 %v2502_v41, %v1178_v61  ;;  %v1181_v0 = vadd.f32 %v1825_v62, %v1713_v59 }
 0x180   : > { %v1714_v1 = vpop.f32.mrb[24].mxu0 }
 0x181   : > { %1412 = vst [vmem:[%s2505_s9 + $0x50] sm:$0xff] %v1380_v63  ;;  %v1381_v2 = vadd.f32 %v2502_v41, %v1181_v0  ;;  %v1826_v3 = vpop.f32.mrb[24].mxu1  ;;  %v1715_v4 = vpop.f32.mrb[25].mxu0 }
 0x182   : > { %v1716_v5 = vadd.f32 %v1715_v4, %v1714_v1  ;;  %v1827_v6 = vpop.f32.mrb[25].mxu1  ;;  %v1717_v7 = vpop.f32.mrb[26].mxu0 }
 0x183   : > { %1413 = vst [vmem:[%s2505_s9 + $0x58] sm:$0xff] %v1381_v2  ;;  %v1828_v8 = vadd.f32 %v1827_v6, %v1826_v3  ;;  %v1829_v9 = vpop.f32.mrb[26].mxu1  ;;  %v1718_v10 = vpop.f32.mrb[27].mxu0 }
 0x184   : > { %v1719_v11 = vadd.f32 %v1718_v10, %v1717_v7  ;;  %v1830_v12 = vpop.f32.mrb[27].mxu1 }
 0x185   : > { %v1186_v13 = vadd.f32 %v1828_v8, %v1716_v5  ;;  %v1831_v14 = vadd.f32 %v1830_v12, %v1829_v9 }
 0x187   : > { %v1382_v15 = vadd.f32 %v2502_v41, %v1186_v13  ;;  %v1189_v16 = vadd.f32 %v1831_v14, %v1719_v11 }
 0x188   : > { %v1720_v17 = vpop.f32.mrb[28].mxu0 }
 0x189   : > { %1414 = vst [vmem:[%s2505_s9 + $0x60] sm:$0xff] %v1382_v15  ;;  %v1383_v18 = vadd.f32 %v2502_v41, %v1189_v16  ;;  %v1832_v19 = vpop.f32.mrb[28].mxu1  ;;  %v1721_v20 = vpop.f32.mrb[29].mxu0 }
 0x18a   : > { %v1722_v21 = vadd.f32 %v1721_v20, %v1720_v17  ;;  %v1833_v22 = vpop.f32.mrb[29].mxu1  ;;  %v1723_v23 = vpop.f32.mrb[30].mxu0 }
 0x18b   : > { %1415 = vst [vmem:[%s2505_s9 + $0x68] sm:$0xff] %v1383_v18  ;;  %v1834_v24 = vadd.f32 %v1833_v22, %v1832_v19  ;;  %v1835_v25 = vpop.f32.mrb[30].mxu1  ;;  %v1724_v26 = vpop.f32.mrb[31].mxu0 }
 0x18c   : > { %v1725_v27 = vadd.f32 %v1724_v26, %v1723_v23  ;;  %v1836_v28 = vpop.f32.mrb[31].mxu1 }
 0x18d   : > { %v1194_v29 = vadd.f32 %v1834_v24, %v1722_v21  ;;  %v1837_v30 = vadd.f32 %v1836_v28, %v1835_v25 }
 0x18f   : > { %v1384_v31 = vadd.f32 %v2502_v41, %v1194_v29  ;;  %v1197_v32 = vadd.f32 %v1837_v30, %v1725_v27 }
 0x190   : > { %v1726_v33 = vpop.f32.mrb[32].mxu0 }
 0x191   : > { %1416 = vst [vmem:[%s2505_s9 + $0x70] sm:$0xff] %v1384_v31  ;;  %v1385_v34 = vadd.f32 %v2502_v41, %v1197_v32  ;;  %v1838_v35 = vpop.f32.mrb[32].mxu1  ;;  %v1727_v36 = vpop.f32.mrb[33].mxu0 }
 0x192   : > { %v1728_v37 = vadd.f32 %v1727_v36, %v1726_v33  ;;  %v1839_v38 = vpop.f32.mrb[33].mxu1  ;;  %v1729_v39 = vpop.f32.mrb[34].mxu0 }
 0x193   : > { %1417 = vst [vmem:[%s2505_s9 + $0x78] sm:$0xff] %v1385_v34  ;;  %v1840_v40 = vadd.f32 %v1839_v38, %v1838_v35  ;;  %v1841_v42 = vpop.f32.mrb[34].mxu1  ;;  %v1730_v43 = vpop.f32.mrb[35].mxu0 }
 0x194   : > { %v1731_v44 = vadd.f32 %v1730_v43, %v1729_v39  ;;  %v1842_v45 = vpop.f32.mrb[35].mxu1 }
 0x195   : > { %v1202_v46 = vadd.f32 %v1840_v40, %v1728_v37  ;;  %v1843_v47 = vadd.f32 %v1842_v45, %v1841_v42 }
 0x197   : > { %v1386_v48 = vadd.f32 %v2502_v41, %v1202_v46  ;;  %v1205_v49 = vadd.f32 %v1843_v47, %v1731_v44 }
 0x198   : > { %v1732_v50 = vpop.f32.mrb[36].mxu0 }
 0x199   : > { %1418 = vst [vmem:[%s2505_s9 + $0x80] sm:$0xff] %v1386_v48  ;;  %v1387_v51 = vadd.f32 %v2502_v41, %v1205_v49  ;;  %v1844_v52 = vpop.f32.mrb[36].mxu1  ;;  %v1733_v53 = vpop.f32.mrb[37].mxu0 }
 0x19a   : > { %v1734_v54 = vadd.f32 %v1733_v53, %v1732_v50  ;;  %v1845_v55 = vpop.f32.mrb[37].mxu1  ;;  %v1735_v56 = vpop.f32.mrb[38].mxu0 }
 0x19b   : > { %1419 = vst [vmem:[%s2505_s9 + $0x88] sm:$0xff] %v1387_v51  ;;  %v1846_v57 = vadd.f32 %v1845_v55, %v1844_v52  ;;  %v1847_v58 = vpop.f32.mrb[38].mxu1  ;;  %v1736_v59 = vpop.f32.mrb[39].mxu0 }
 0x19c   : > { %v1737_v60 = vadd.f32 %v1736_v59, %v1735_v56  ;;  %v1848_v61 = vpop.f32.mrb[39].mxu1 }
 0x19d   : > { %v1210_v62 = vadd.f32 %v1846_v57, %v1734_v54  ;;  %v1849_v63 = vadd.f32 %v1848_v61, %v1847_v58 }
 0x19f   : > { %v1388_v0 = vadd.f32 %v2502_v41, %v1210_v62  ;;  %v1213_v1 = vadd.f32 %v1849_v63, %v1737_v60 }
 0x1a0   : > { %v1738_v2 = vpop.f32.mrb[40].mxu0 }
 0x1a1   : > { %1420 = vst [vmem:[%s2505_s9 + $0x90] sm:$0xff] %v1388_v0  ;;  %v1389_v3 = vadd.f32 %v2502_v41, %v1213_v1  ;;  %v1850_v4 = vpop.f32.mrb[40].mxu1  ;;  %v1739_v5 = vpop.f32.mrb[41].mxu0 }
 0x1a2   : > { %v1740_v6 = vadd.f32 %v1739_v5, %v1738_v2  ;;  %v1851_v7 = vpop.f32.mrb[41].mxu1  ;;  %v1741_v8 = vpop.f32.mrb[42].mxu0 }
 0x1a3   : > { %1421 = vst [vmem:[%s2505_s9 + $0x98] sm:$0xff] %v1389_v3  ;;  %v1852_v9 = vadd.f32 %v1851_v7, %v1850_v4  ;;  %v1853_v10 = vpop.f32.mrb[42].mxu1  ;;  %v1742_v11 = vpop.f32.mrb[43].mxu0 }
 0x1a4   : > { %v1743_v12 = vadd.f32 %v1742_v11, %v1741_v8  ;;  %v1854_v13 = vpop.f32.mrb[43].mxu1 }
 0x1a5   : > { %v1218_v14 = vadd.f32 %v1852_v9, %v1740_v6  ;;  %v1855_v15 = vadd.f32 %v1854_v13, %v1853_v10 }
 0x1a7   : > { %v1390_v16 = vadd.f32 %v2502_v41, %v1218_v14  ;;  %v1221_v17 = vadd.f32 %v1855_v15, %v1743_v12 }
 0x1a8   : > { %v1744_v18 = vpop.f32.mrb[44].mxu0 }
 0x1a9   : > { %1422 = vst [vmem:[%s2505_s9 + $0xa0] sm:$0xff] %v1390_v16  ;;  %v1391_v19 = vadd.f32 %v2502_v41, %v1221_v17  ;;  %v1856_v20 = vpop.f32.mrb[44].mxu1  ;;  %v1745_v21 = vpop.f32.mrb[45].mxu0 }
 0x1aa   : > { %v1746_v22 = vadd.f32 %v1745_v21, %v1744_v18  ;;  %v1857_v23 = vpop.f32.mrb[45].mxu1  ;;  %v1747_v24 = vpop.f32.mrb[46].mxu0 }
 0x1ab   : > { %1423 = vst [vmem:[%s2505_s9 + $0xa8] sm:$0xff] %v1391_v19  ;;  %v1858_v25 = vadd.f32 %v1857_v23, %v1856_v20  ;;  %v1859_v26 = vpop.f32.mrb[46].mxu1  ;;  %v1748_v27 = vpop.f32.mrb[47].mxu0 }
 0x1ac   : > { %v1749_v28 = vadd.f32 %v1748_v27, %v1747_v24  ;;  %v1860_v29 = vpop.f32.mrb[47].mxu1 }
 0x1ad   : > { %v1226_v30 = vadd.f32 %v1858_v25, %v1746_v22  ;;  %v1861_v31 = vadd.f32 %v1860_v29, %v1859_v26 }
 0x1af   : > { %v1392_v32 = vadd.f32 %v2502_v41, %v1226_v30  ;;  %v1229_v33 = vadd.f32 %v1861_v31, %v1749_v28 }
 0x1b0   : > { %v1750_v34 = vpop.f32.mrb[48].mxu0 }
 0x1b1   : > { %1424 = vst [vmem:[%s2505_s9 + $0xb0] sm:$0xff] %v1392_v32  ;;  %v1393_v35 = vadd.f32 %v2502_v41, %v1229_v33  ;;  %v1862_v36 = vpop.f32.mrb[48].mxu1  ;;  %v1751_v37 = vpop.f32.mrb[49].mxu0 }
 0x1b2   : > { %v1752_v38 = vadd.f32 %v1751_v37, %v1750_v34  ;;  %v1863_v39 = vpop.f32.mrb[49].mxu1  ;;  %v1753_v40 = vpop.f32.mrb[50].mxu0 }
 0x1b3   : > { %1425 = vst [vmem:[%s2505_s9 + $0xb8] sm:$0xff] %v1393_v35  ;;  %v1864_v42 = vadd.f32 %v1863_v39, %v1862_v36  ;;  %v1865_v43 = vpop.f32.mrb[50].mxu1  ;;  %v1754_v44 = vpop.f32.mrb[51].mxu0 }
 0x1b4   : > { %v1755_v45 = vadd.f32 %v1754_v44, %v1753_v40  ;;  %v1866_v46 = vpop.f32.mrb[51].mxu1 }
 0x1b5   : > { %v1234_v47 = vadd.f32 %v1864_v42, %v1752_v38  ;;  %v1867_v48 = vadd.f32 %v1866_v46, %v1865_v43 }
 0x1b7   : > { %v1394_v49 = vadd.f32 %v2502_v41, %v1234_v47  ;;  %v1237_v50 = vadd.f32 %v1867_v48, %v1755_v45 }
 0x1b8   : > { %v1756_v51 = vpop.f32.mrb[52].mxu0 }
 0x1b9   : > { %1426 = vst [vmem:[%s2505_s9 + $0xc0] sm:$0xff] %v1394_v49  ;;  %v1395_v52 = vadd.f32 %v2502_v41, %v1237_v50  ;;  %v1868_v53 = vpop.f32.mrb[52].mxu1  ;;  %v1757_v54 = vpop.f32.mrb[53].mxu0 }
 0x1ba   : > { %v1758_v55 = vadd.f32 %v1757_v54, %v1756_v51  ;;  %v1869_v56 = vpop.f32.mrb[53].mxu1  ;;  %v1759_v57 = vpop.f32.mrb[54].mxu0 }
 0x1bb   : > { %1427 = vst [vmem:[%s2505_s9 + $0xc8] sm:$0xff] %v1395_v52  ;;  %v1870_v58 = vadd.f32 %v1869_v56, %v1868_v53  ;;  %v1871_v59 = vpop.f32.mrb[54].mxu1  ;;  %v1760_v60 = vpop.f32.mrb[55].mxu0 }
 0x1bc   : > { %v1761_v61 = vadd.f32 %v1760_v60, %v1759_v57  ;;  %v1872_v62 = vpop.f32.mrb[55].mxu1 }
 0x1bd   : > { %v1242_v63 = vadd.f32 %v1870_v58, %v1758_v55  ;;  %v1873_v0 = vadd.f32 %v1872_v62, %v1871_v59 }
 0x1bf   : > { %v1396_v1 = vadd.f32 %v2502_v41, %v1242_v63  ;;  %v1245_v2 = vadd.f32 %v1873_v0, %v1761_v61 }
 0x1c0   : > { %v1762_v3 = vpop.f32.mrb[56].mxu0 }
 0x1c1   : > { %1428 = vst [vmem:[%s2505_s9 + $0xd0] sm:$0xff] %v1396_v1  ;;  %v1397_v4 = vadd.f32 %v2502_v41, %v1245_v2  ;;  %v1874_v5 = vpop.f32.mrb[56].mxu1  ;;  %v1763_v6 = vpop.f32.mrb[57].mxu0 }
 0x1c2   : > { %v1764_v7 = vadd.f32 %v1763_v6, %v1762_v3  ;;  %v1875_v8 = vpop.f32.mrb[57].mxu1  ;;  %v1765_v9 = vpop.f32.mrb[58].mxu0 }
 0x1c3   : > { %1429 = vst [vmem:[%s2505_s9 + $0xd8] sm:$0xff] %v1397_v4  ;;  %v1876_v10 = vadd.f32 %v1875_v8, %v1874_v5  ;;  %v1877_v11 = vpop.f32.mrb[58].mxu1  ;;  %v1766_v12 = vpop.f32.mrb[59].mxu0 }
 0x1c4   : > { %v1767_v13 = vadd.f32 %v1766_v12, %v1765_v9  ;;  %v1878_v14 = vpop.f32.mrb[59].mxu1 }
 0x1c5   : > { %v1250_v15 = vadd.f32 %v1876_v10, %v1764_v7  ;;  %v1879_v16 = vadd.f32 %v1878_v14, %v1877_v11 }
 0x1c7   : > { %v1398_v17 = vadd.f32 %v2502_v41, %v1250_v15  ;;  %v1253_v18 = vadd.f32 %v1879_v16, %v1767_v13 }
 0x1c8   : > { %v1768_v19 = vpop.f32.mrb[60].mxu0 }
 0x1c9   : > { %1430 = vst [vmem:[%s2505_s9 + $0xe0] sm:$0xff] %v1398_v17  ;;  %v1399_v20 = vadd.f32 %v2502_v41, %v1253_v18  ;;  %v1880_v21 = vpop.f32.mrb[60].mxu1  ;;  %v1769_v22 = vpop.f32.mrb[61].mxu0 }
 0x1ca   : > { %v1770_v23 = vadd.f32 %v1769_v22, %v1768_v19  ;;  %v1881_v24 = vpop.f32.mrb[61].mxu1  ;;  %v1771_v25 = vpop.f32.mrb[62].mxu0 }
 0x1cb   : > { %1431 = vst [vmem:[%s2505_s9 + $0xe8] sm:$0xff] %v1399_v20  ;;  %v1882_v26 = vadd.f32 %v1881_v24, %v1880_v21  ;;  %v1883_v27 = vpop.f32.mrb[62].mxu1  ;;  %v1772_v28 = vpop.f32.mrb[63].mxu0 }
 0x1cc   : > { %v1773_v29 = vadd.f32 %v1772_v28, %v1771_v25  ;;  %v1884_v30 = vpop.f32.mrb[63].mxu1 }
 0x1cd   : > { %v1258_v31 = vadd.f32 %v1882_v26, %v1770_v23  ;;  %v1885_v32 = vadd.f32 %v1884_v30, %v1883_v27 }
 0x1cf   : > { %v1400_v33 = vadd.f32 %v2502_v41, %v1258_v31  ;;  %v1261_v34 = vadd.f32 %v1885_v32, %v1773_v29 }
 0x1d1   : > { %1432 = vst [vmem:[%s2505_s9 + $0xf0] sm:$0xff] %v1400_v33  ;;  %v1401_v35 = vadd.f32 %v2502_v41, %v1261_v34 }
 0x1d3   : > { %1433 = vst [vmem:[%s2505_s9 + $0xf8] sm:$0xff] %v1401_v35 }
 0x1d4   : > { %2164 = shalt.err (!%p2161_p5)
}
 0x1d5   : > { %s2165_s29 = scalar_lea.hbm %s2572_s7, 4096  ;;  %s2169_s20 = scalar_lea.hbm %s2629_s3, 8192 }
 0x1d6   : > { %p2166_p9 = scmp.ne.s32.totalorder %s2572_s7, %s2165_s29  ;;  %p2170_p3 = scmp.lt.u32.totalorder %s2572_s7, %s2629_s3 }
 0x1d7   : > { %p2171_p7 = scmp.lt.u32.totalorder %s2169_s20, %s2165_s29  ;;  %p2173_p4 = scmp.lt.u32.totalorder %s2165_s29, %s2572_s7 }
 0x1d8   : > { %p2167_p1 = pnand %p2166_p9, %p2364_p10 }
 0x1d9   : > { %p2172_p13 = por %p2171_p7, %p2170_p3 }
 0x1da   : > { %p2168_p2 = pneg %p2167_p1 }
 0x1db   : > { %p2174_p6 = por %p2173_p4, %p2172_p13 }
 0x1dd   : > { %p2175_p8 = pnand %p2174_p6, %p2168_p2 }
 0x1df   : > { %2178 = shalt.err (!%p2175_p8)
}
 0x1e0   : > { %s2246_s9 = smov 128   ;;  %s2247_s10 = smov 8  }
 0x1e1   : > { %1892 = dma.vmem_to_hbm [thread:$0]  (%p2364_p10), %s2574_s11, 4096, %s2572_s7, %s1435_s8, %s2246_s9, %s2246_s9, %s2247_s10  }
 0x1e2 PF: > { %s1463_s18 = sand.u32 1, %s2217_s12   ;;  %p2647_p12 = scmp.ne.s32.totalorder %s2637_s23, 0 }
 0x1e3   : > { %p2648_p11 = scmp.ge.s32.totalorder %s2237_s17, 2  ;;  %s1464_s26 = scalar_lea.sflag [#allocation5], %s1463_s18 }
 0x1e5   : > { %p1903_p0 = pnand %p2648_p11, %p2647_p12 }
 0x1e7   : > { %2212 = dma.done.wait (!%p1903_p0), %s1464_s26, 4096  }
 0x1e8   : > { %2214 = vsyncadd (!%p1903_p0), %s1464_s26, 4294963200  ;;  %s20_s17 = sadd.s32 1, %s2237_s17   ;;  %s2649_s12 = smov %s2221_s13 }
 0x1e9   : > { %p17_p5 = scmp.ge.s32.totalorder %s20_s17, 4   ;;  %s2650_s13 = smov %s2225_s14 }
 0x1ea   : > { %s2651_s14 = smov %s2373_s5  ;;  %s2652_s15 = smov %s2233_s16 }
 0x1eb   : > { %s2653_s16 = smov %s2655_s28  ;;  %19 = sbr.rel (!%p17_p5) target bundleno = 7 (0x7), region = 90 }
 0x1f2   :  { %1469 = vsyncpa [#allocation4], 1 }
 0x1f3   :  { %1471 = vsyncpa [#allocation4 + $0x1], 1 }
 0x1f4   :  { %1472 = vsyncpa [#allocation7], 1 }
 0x1f5   :  { %1473 = vsyncpa [#allocation5], 1 }
 0x1f6   :  { %1475 = vsyncpa [#allocation5 + $0x1], 1 }

</bundles_post_ra>
